<compile_context>
chip_gen: v7x
topology: tpu7x:2x2x1
jax: 0.10.0
libtpu: 0.0.40
codegen_flags: <defaults>
</compile_context>

<pallas_src>
import jax
import jax.numpy as jnp
from jax.experimental import pallas as pl
from jax.experimental.pallas import tpu as pltpu

LANES = 128                 # lane width of a vreg
SUBLANES = 8                # sublanes per f32 vreg
MAX_BLOCK_ROWS = 1024       # rows per grid step -> (1024, 128) f32 tile = 512 KiB
_CHUNK = SUBLANES * LANES   # bulk granularity (1024 elements)


def _make_mse_kernel(block_rows, total_rows, needs_mask):
    """Build the sum-of-squared-differences kernel for a (rows, 128) slab."""
    n_groups = block_rows // SUBLANES

    def kernel(a_ref, b_ref, out_ref, acc_ref):
        i = pl.program_id(0)              # parallel axis (TensorCore shard)
        k = pl.program_id(1)              # streaming / reduction axis
        n_k = pl.num_programs(1)

        @pl.when(k == 0)
        def _init():
            acc_ref[...] = jnp.zeros_like(acc_ref)

        # Inputs arrive in their native dtype; upcast to f32 in-kernel
        # (explicit f32 compute also keeps v5e's VPU on its native width).
        diff = a_ref[...].astype(jnp.float32) - b_ref[...].astype(jnp.float32)
        sq = diff * diff

        if needs_mask:
            # Zero rows past the true end of the slab.  This covers both the
            # partially-filled last block and fully-duplicated (index-clamped)
            # blocks, so they contribute nothing to the sum.
            row0 = (i * n_k + k) * block_rows
            local = jax.lax.broadcasted_iota(jnp.int32, (block_rows, LANES), 0)
            sq = jnp.where(local + row0 < total_rows, sq, 0.0)

        # Wide elementwise accumulation: pure VPU work, no cross-lane reduce
        # in the steady state.
        acc_ref[...] += sq

        @pl.when(k == n_k - 1)
        def _finalize():
            # Fold the (block_rows, 128) accumulator into one vreg-shaped
            # (8, 128) partial per core; the final scalar sum happens outside.
            partial = acc_ref[0:SUBLANES, :]
            for g in range(1, n_groups):
                partial = partial + acc_ref[g * SUBLANES:(g + 1) * SUBLANES, :]
            out_ref[...] = partial

    return kernel


def feature_refine_loss(feat_refine, gt_feat, loss_weight=1.0):
    """MSE loss (reduction='mean') * loss_weight, computed with a Pallas kernel."""
    assert feat_refine.shape == gt_feat.shape
    n = int(feat_refine.size)
    a = feat_refine.reshape(-1)           # free reshape, native dtype
    b = gt_feat.reshape(-1)

    sum_sq = jnp.float32(0.0)

    # Ragged tail (< 1024 elements): negligible work, handled in plain JAX.
    n_bulk = (n // _CHUNK) * _CHUNK
    if n_bulk < n:
        td = a[n_bulk:].astype(jnp.float32) - b[n_bulk:].astype(jnp.float32)
        sum_sq = sum_sq + jnp.sum(td * td)

    if n_bulk > 0:
        a2 = (a if n_bulk == n else a[:n_bulk]).reshape(-1, LANES)
        b2 = (b if n_bulk == n else b[:n_bulk]).reshape(-1, LANES)
        rows = n_bulk // LANES                     # multiple of 8

        block_rows = min(MAX_BLOCK_ROWS, rows)     # multiple of 8
        n_blocks = pl.cdiv(rows, block_rows)
        # Shard the block range across 2 TensorCores (v7x megacore); on
        # single-TC chips (v5e/v6e) this is just a harmless sequential split.
        n_parallel = min(2, n_blocks)
        n_k = pl.cdiv(n_blocks, n_parallel)
        needs_mask = (n_parallel * n_k * block_rows) != rows

        def in_index_map(i, k):
            # Clamp to the last real block; duplicated blocks are fully masked
            # inside the kernel, so they contribute nothing.
            return (jnp.minimum(i * n_k + k, n_blocks - 1), 0)

        partials = pl.pallas_call(
            _make_mse_kernel(block_rows, rows, needs_mask),
            out_shape=jax.ShapeDtypeStruct((n_parallel * SUBLANES, LANES),
                                           jnp.float32),
            grid_spec=pltpu.PrefetchScalarGridSpec(
                num_scalar_prefetch=0,
                grid=(n_parallel, n_k),
                in_specs=[
                    pl.BlockSpec((block_rows, LANES), in_index_map),
                    pl.BlockSpec((block_rows, LANES), in_index_map),
                ],
                out_specs=pl.BlockSpec((SUBLANES, LANES), lambda i, k: (i, 0)),
                scratch_shapes=[pltpu.VMEM((block_rows, LANES), jnp.float32)],
            ),
            compiler_params=pltpu.CompilerParams(
                dimension_semantics=("parallel", "arbitrary"),
            ),
        )(a2, b2)
        sum_sq = sum_sq + jnp.sum(partials)

    # mean over the true element count + loss_weight scaling (scalar glue).
    return (sum_sq / jnp.float32(n)) * jnp.float32(loss_weight)


class FeatureRefineLoss:
    """Functional equivalent of the PyTorch module."""

    def __init__(self, loss_weight=1.0):
        self.loss_weight = loss_weight

    def __call__(self, feat_refine, gt_feat):
        return feature_refine_loss(feat_refine, gt_feat, self.loss_weight)


if __name__ == "__main__":
    key = jax.random.PRNGKey(0)
    k1, k2, k3, k4, k5, k6, k7, k8, k9, k10 = jax.random.split(key, 10)

    # --- primary check: small NCHW feature maps (batch=2, channels=4, 16x16) ---
    feat_refine = jax.random.normal(k1, (2, 4, 16, 16), dtype=jnp.float32)
    gt_feat = jax.random.normal(k2, (2, 4, 16, 16), dtype=jnp.float32)
    loss_mod = FeatureRefineLoss(loss_weight=1.0)
    loss = jax.block_until_ready(loss_mod(feat_refine, gt_feat))
    ref = jnp.mean((feat_refine - gt_feat) ** 2)
    assert jnp.allclose(loss, ref, rtol=1e-5, atol=1e-6), (loss, ref)

    # --- bf16 inputs streamed natively (upcast happens in-kernel) ---
    a_bf = jax.random.normal(k3, (2, 4, 16, 16), dtype=jnp.bfloat16)
    b_bf = jax.random.normal(k4, (2, 4, 16, 16), dtype=jnp.bfloat16)
    loss_bf = jax.block_until_ready(feature_refine_loss(a_bf, b_bf, 2.0))
    ref_bf = jnp.mean((a_bf.astype(jnp.float32) - b_bf.astype(jnp.float32)) ** 2) * 2.0
    assert jnp.allclose(loss_bf, ref_bf, rtol=1e-4, atol=1e-6), (loss_bf, ref_bf)

    # --- ragged size: in-kernel masked edge block + plain-JAX tail ---
    a_r = jax.random.normal(k5, (2, 4, 129, 129), dtype=jnp.float32)
    b_r = jax.random.normal(k6, (2, 4, 129, 129), dtype=jnp.float32)
    loss_r = jax.block_until_ready(feature_refine_loss(a_r, b_r, 1.0))
    ref_r = jnp.mean((a_r - b_r) ** 2)
    assert jnp.allclose(loss_r, ref_r, rtol=1e-4, atol=1e-6), (loss_r, ref_r)

    # --- multi-step accumulation + 2-way core split + clamped duplicate block ---
    a_m = jax.random.normal(k7, (2, 2, 256, 257), dtype=jnp.float32)
    b_m = jax.random.normal(k8, (2, 2, 256, 257), dtype=jnp.float32)
    loss_m = jax.block_until_ready(feature_refine_loss(a_m, b_m, 0.5))
    ref_m = jnp.mean((a_m - b_m) ** 2) * 0.5
    assert jnp.allclose(loss_m, ref_m, rtol=1e-4, atol=1e-6), (loss_m, ref_m)

    # --- tiny input (< one 1024-element chunk): pure-JAX path ---
    a_t = jax.random.normal(k9, (3, 5, 7), dtype=jnp.float32)
    b_t = jax.random.normal(k10, (3, 5, 7), dtype=jnp.float32)
    loss_t = jax.block_until_ready(feature_refine_loss(a_t, b_t, 1.0))
    ref_t = jnp.mean((a_t - b_t) ** 2)
    assert jnp.allclose(loss_t, ref_t, rtol=1e-5, atol=1e-6), (loss_t, ref_t)

    print("KERNEL_OK")
</pallas_src>

<mosaic_0001>
module attributes {stable_mosaic.version = 11 : i64} {
  func.func @kernel(%arg0: i32, %arg1: i32, %arg2: memref<16x128xf32, #tpu.memory_space<vmem>>, %arg3: memref<16x128xf32, #tpu.memory_space<vmem>>, %arg4: memref<8x128xf32, #tpu.memory_space<vmem>>, %arg5: memref<16x128xf32, #tpu.memory_space<vmem>>) attributes {dimension_semantics = [#tpu.dimension_semantics<parallel>, #tpu.dimension_semantics<arbitrary>], iteration_bounds = array<i64: 1, 1>, scalar_prefetch = 0 : i64, scratch_operands = 1 : i64, tpu.core_type = #tpu.core_type<tc>, window_params = [{transform_indices = @transform_0, window_bounds = array<i64: 16, 128>}, {transform_indices = @transform_1, window_bounds = array<i64: 16, 128>}, {transform_indices = @transform_2, window_bounds = array<i64: 8, 128>}]} {
    %c0_i32 = arith.constant 0 : i32
    %0 = arith.cmpi eq, %arg1, %c0_i32 : i32
    %1 = arith.extui %0 : i1 to i32
    %c0_i32_0 = arith.constant 0 : i32
    %2 = arith.cmpi ne, %1, %c0_i32_0 : i32
    scf.if %2 {
      %cst = arith.constant 0.000000e+00 : f32
      %13 = vector.broadcast %cst : f32 to vector<16x128xf32>
      %c0_10 = arith.constant 0 : index
      %c0_11 = arith.constant 0 : index
      %14 = vector.load %arg5[%c0_10, %c0_11] : memref<16x128xf32, #tpu.memory_space<vmem>>, vector<16x128xf32>
      tpu.vector_store %arg5[%c0_10, %c0_11], %13 {strides = array<i32>} : memref<16x128xf32, #tpu.memory_space<vmem>>, vector<16x128xf32>,
    } else {
    }
    %c0 = arith.constant 0 : index
    %c0_1 = arith.constant 0 : index
    %3 = vector.load %arg2[%c0, %c0_1] : memref<16x128xf32, #tpu.memory_space<vmem>>, vector<16x128xf32>
    %c0_2 = arith.constant 0 : index
    %c0_3 = arith.constant 0 : index
    %4 = vector.load %arg3[%c0_2, %c0_3] : memref<16x128xf32, #tpu.memory_space<vmem>>, vector<16x128xf32>
    %5 = arith.subf %3, %4 : vector<16x128xf32>
    %6 = arith.mulf %5, %5 : vector<16x128xf32>
    %c0_4 = arith.constant 0 : index
    %c0_5 = arith.constant 0 : index
    %7 = vector.load %arg5[%c0_4, %c0_5] : memref<16x128xf32, #tpu.memory_space<vmem>>, vector<16x128xf32>
    %8 = arith.addf %7, %6 : vector<16x128xf32>
    %c0_6 = arith.constant 0 : index
    %c0_7 = arith.constant 0 : index
    %9 = vector.load %arg5[%c0_6, %c0_7] : memref<16x128xf32, #tpu.memory_space<vmem>>, vector<16x128xf32>
    tpu.vector_store %arg5[%c0_6, %c0_7], %8 {strides = array<i32>} : memref<16x128xf32, #tpu.memory_space<vmem>>, vector<16x128xf32>,
    %c0_i32_8 = arith.constant 0 : i32
    %10 = arith.cmpi eq, %arg1, %c0_i32_8 : i32
    %11 = arith.extui %10 : i1 to i32
    %c0_i32_9 = arith.constant 0 : i32
    %12 = arith.cmpi ne, %11, %c0_i32_9 : i32
    scf.if %12 {
      %c0_10 = arith.constant 0 : index
      %c0_11 = arith.constant 0 : index
      %13 = vector.load %arg5[%c0_10, %c0_11] : memref<16x128xf32, #tpu.memory_space<vmem>>, vector<8x128xf32>
      %c8 = arith.constant 8 : index
      %c0_12 = arith.constant 0 : index
      %14 = vector.load %arg5[%c8, %c0_12] : memref<16x128xf32, #tpu.memory_space<vmem>>, vector<8x128xf32>
      %15 = arith.addf %13, %14 : vector<8x128xf32>
      %c0_13 = arith.constant 0 : index
      %c0_14 = arith.constant 0 : index
      %16 = vector.load %arg4[%c0_13, %c0_14] : memref<8x128xf32, #tpu.memory_space<vmem>>, vector<8x128xf32>
      tpu.vector_store %arg4[%c0_13, %c0_14], %15 {strides = array<i32>} : memref<8x128xf32, #tpu.memory_space<vmem>>, vector<8x128xf32>,
    } else {
    }
    return
  }
  func.func @transform_0(%arg0: i32, %arg1: i32) -> (i32, i32) {
    %c1_i32 = arith.constant 1 : i32
    %0 = arith.muli %arg0, %c1_i32 : i32
    %1 = arith.addi %0, %arg1 : i32
    %c0_i32 = arith.constant 0 : i32
    %2 = arith.minsi %1, %c0_i32 : i32
    %c0_i32_0 = arith.constant 0 : i32
    %c0_i32_1 = arith.constant 0 : i32
    return %2, %c0_i32_0 : i32, i32
  }
  func.func @transform_1(%arg0: i32, %arg1: i32) -> (i32, i32) {
    %c1_i32 = arith.constant 1 : i32
    %0 = arith.muli %arg0, %c1_i32 : i32
    %1 = arith.addi %0, %arg1 : i32
    %c0_i32 = arith.constant 0 : i32
    %2 = arith.minsi %1, %c0_i32 : i32
    %c0_i32_0 = arith.constant 0 : i32
    %c0_i32_1 = arith.constant 0 : i32
    return %2, %c0_i32_0 : i32, i32
  }
  func.func @transform_2(%arg0: i32, %arg1: i32) -> (i32, i32) {
    %c0_i32 = arith.constant 0 : i32
    %c0_i32_0 = arith.constant 0 : i32
    return %arg0, %c0_i32 : i32, i32
  }
}

</mosaic_0001>

<bundles_post_ra>
// kernel: tpu_custom_call.1
= control target key start
LH: loop header
LB: loop body
LE: loop exit
PB: predicated region body
PF: predicated region fallthrough
CT: control target
= control target key end

     0   :  { %7 = vsyncpa [#allocation4], 0  ;;  %s240_s0 = inlined_call_operand.hbm [shape: f32[16,128], index: 0, kind: input, shape index: {}]   ;;  %s241_s1 = inlined_call_operand.hbm [shape: f32[16,128], index: 1, kind: input, shape index: {}]   ;;  %s242_s2 = inlined_call_operand.hbm [shape: f32[8,128], index: 2, kind: output, shape index: {}]  }
   0x1   :  { %8 = vsyncpa [#allocation7], 0 }
   0x2   :  { %9 = vsyncpa [#allocation5], 0  ;;  %s184_s9 = smov [#allocation3]   ;;  %s112_s13 = scalar_lea.hbm %s240_s0, 256 }
   0x3   :  { %s21_s10 = sshll.u32 %s184_s9, 4  ;;  %p113_p0 = scmp.ne.s32.totalorder %s240_s0, %s112_s13  ;;  %s22_s10 = int_to_ptr.vmem [resolvable:$true] %s21_s10 }
   0x4   :  { %p116_p1 = scmp.lt.u32.totalorder %s112_s13, %s240_s0 }
   0x6   :  { %p118_p2 = pnand %p116_p1, %p113_p0 }
   0x8   :  { %121 = shalt.err (!%p118_p2)
}
   0x9   :  { %s122_s18 = scalar_lea.vmem %s22_s10, 256  ;;  %p127_p4 = scmp.lt.s32.totalorder %s22_s10, %s22_s10 }
   0xa   :  { %p123_p3 = scmp.ne.s32.totalorder %s22_s10, %s122_s18  ;;  %p128_p5 = scmp.lt.s32.totalorder %s122_s18, %s122_s18 }
   0xc   :  { %p129_p6 = por %p128_p5, %p127_p4 }
   0xe   :  { %p130_p7 = pnand %p129_p6, %p123_p3 }
  0x10   :  { %133 = shalt.err (!%p130_p7)
}
  0x11   :  { %s185_s19 = smov 128   ;;  %s186_s20 = smov 8  }
  0x12   :  { %27 = dma.hbm_to_vmem [thread:$0]  %s240_s0, 256, %s22_s10, [#allocation4], %s185_s19, %s185_s19, %s186_s20  }
  0x13   :  { %s187_s23 = smov [#allocation6]   ;;  %s134_s27 = scalar_lea.hbm %s241_s1, 256 }
  0x14   :  { %s39_s24 = sshll.u32 %s187_s23, 4  ;;  %p135_p8 = scmp.ne.s32.totalorder %s241_s1, %s134_s27  ;;  %s40_s24 = int_to_ptr.vmem [resolvable:$true] %s39_s24 }
  0x15   :  { %p138_p9 = scmp.lt.u32.totalorder %s134_s27, %s241_s1 }
  0x17   :  { %p140_p10 = pnand %p138_p9, %p135_p8 }
  0x19   :  { %143 = shalt.err (!%p140_p10)
}
  0x1a   :  { %s144_s4 = scalar_lea.vmem %s40_s24, 256  ;;  %p149_p12 = scmp.lt.s32.totalorder %s40_s24, %s40_s24 }
  0x1b   :  { %p145_p11 = scmp.ne.s32.totalorder %s40_s24, %s144_s4  ;;  %p150_p13 = scmp.lt.s32.totalorder %s144_s4, %s144_s4 }
  0x1d   :  { %p151_p0 = por %p150_p13, %p149_p12 }
  0x1f   :  { %p152_p1 = pnand %p151_p0, %p145_p11 }
  0x21   :  { %155 = shalt.err (!%p152_p1)
}
  0x22   :  { %45 = dma.hbm_to_vmem [thread:$0]  %s241_s1, 256, %s40_s24, [#allocation7], %s185_s19, %s185_s19, %s186_s20  }
  0x23   :  { %178 = dma.done.wait [#allocation4], 256  }
  0x24   :  { %179 = vsyncadd [#allocation4], 4294967040 }
  0x25   :  { %180 = dma.done.wait [#allocation7], 256  }
  0x26   :  { %181 = vsyncadd [#allocation7], 4294967040  ;;  %v66_v0 = vld [vmem:[#allocation3] sm:$0xff]  ;;  %v67_v1 = vld [vmem:[#allocation3 + $0x8] sm:$0xff]  ;;  %s188_s6 = smov [#allocation8]  }
  0x27   :  { %v68_v2 = vld [vmem:[#allocation6] sm:$0xff]  ;;  %v69_v3 = vld [vmem:[#allocation6 + $0x8] sm:$0xff]  ;;  %s93_s7 = sshll.u32 %s188_s6, 4  ;;  %s94_s7 = int_to_ptr.vmem [resolvable:$true] %s93_s7 }
  0x28   :  { %v70_v4 = vsub.f32 %v66_v0, %v68_v2  ;;  %v71_v5 = vsub.f32 %v67_v1, %v69_v3  ;;  %s156_s8 = scalar_lea.vmem %s94_s7, 128  ;;  %p161_p3 = scmp.lt.s32.totalorder %s94_s7, %s94_s7 }
  0x29   :  { %p157_p2 = scmp.ne.s32.totalorder %s94_s7, %s156_s8  ;;  %p162_p4 = scmp.lt.s32.totalorder %s156_s8, %s156_s8 }
  0x2a   :  { %v72_v6 = vmul.f32 %v70_v4, %v70_v4  ;;  %v73_v7 = vmul.f32 %v71_v5, %v71_v5 }
  0x2b   :  { %p163_p5 = por %p162_p4, %p161_p3 }
  0x2c   :  { %v85_v8 = vadd.f32 %v73_v7, %v72_v6 }
  0x2d   :  { %p164_p6 = pnand %p163_p5, %p157_p2 }
  0x2e   :  { %86 = vst [vmem:[#allocation8] sm:$0xff] %v85_v8 }
  0x2f   :  { %167 = shalt.err (!%p164_p6)
}
  0x30   :  { %s168_s10 = scalar_lea.hbm %s242_s2, 128 }
  0x31   :  { %p169_p7 = scmp.ne.s32.totalorder %s242_s2, %s168_s10  ;;  %p172_p8 = scmp.lt.u32.totalorder %s168_s10, %s242_s2 }
  0x33   :  { %p174_p9 = pnand %p172_p8, %p169_p7 }
  0x35   :  { %177 = shalt.err (!%p174_p9)
}
  0x36   :  { %96 = dma.vmem_to_hbm [thread:$0]  %s94_s7, 128, %s242_s2, [#allocation5]  }
  0x37   :  { %182 = dma.done.wait [#allocation5], 128  }
  0x38   :  { %183 = vsyncadd [#allocation5], 4294967168 }
  0x39   :  { %100 = vsyncpa [#allocation4], 1 }
  0x3a   :  { %101 = vsyncpa [#allocation7], 1 }
  0x3b   :  { %102 = vsyncpa [#allocation5], 1 }

</bundles_post_ra>
